<compile_context>
chip_gen: v7x
topology: tpu7x:2x2x1
jax: 0.10.0
libtpu: 0.0.40
codegen_flags: <defaults>
</compile_context>

<pallas_src>
import functools

import jax
import jax.numpy as jnp
from jax.experimental import pallas as pl
from jax.experimental.pallas import tpu as pltpu


# ----------------------------------------------------------------------------
# Parameter / kernel construction (plain JAX glue, mirrors STDLayer.__init__
# and STDLayer.STD_Kernel).
# ----------------------------------------------------------------------------
def std_gauss_factors(sigma, halfsize):
    """Per-class separable Gaussian factors.

    Returns (kx, ky), each (C, K) f32, such that outer(kx[c], ky[c]) equals the
    normalized 2-D kernel of STDLayer.STD_Kernel (including the +1e-15 term):
        ker2d[c, i, j] = g[c,i] * g[c,j] / ((sum_i g[c,i])**2 + 1e-15)
    """
    r = jnp.arange(-halfsize, halfsize + 1, dtype=jnp.float32)
    g = jnp.exp(-(r[None, :] ** 2) / (2.0 * sigma[:, None] ** 2))     # (C, K)
    norm = jnp.sum(g, axis=1, keepdims=True) ** 2 + 1e-15             # == 2-D sum + eps
    return g.astype(jnp.float32), (g / norm).astype(jnp.float32)


def std_gauss_kernel_2d(sigma, halfsize):
    """2-D normalized Gaussian kernels (C, K, K) — used only by the reference."""
    r = jnp.arange(-halfsize, halfsize + 1, dtype=jnp.float32)
    x, y = jnp.meshgrid(r, r, indexing="ij")
    ker = jnp.exp(-(x ** 2 + y ** 2)[None, :, :] / (2.0 * sigma[:, None, None] ** 2))
    ker = ker / (jnp.sum(ker, axis=(1, 2), keepdims=True) + 1e-15)
    return ker.astype(jnp.float32)


# ----------------------------------------------------------------------------
# Pallas kernel: one batch block per grid step, lane-dense (Nb, C, H*W) layout.
# ----------------------------------------------------------------------------
def std_layer_kernel(params_ref, o_ref, fac_ref, ids_ref, u_ref,
                     *, nb_iterations, halfsize, H, W):
    # params_ref : SMEM (2,)          [entropy_epsilon**2, lam]
    # o_ref      : VMEM (Nb, C, HW)   logits (lane-dense)
    # fac_ref    : VMEM (2K, C, 1)    separable factors: [0:K) row pass, [K:2K) col pass
    # ids_ref    : VMEM (2, 1, HW)    int32 column index / row index of each flat pixel
    # u_ref      : VMEM (Nb, C, HW)   output soft segmentation
    eps2 = params_ref[0]
    lam_eps2 = params_ref[1] * params_ref[0]          # lam * eps^2 (hoisted scalar)

    h = halfsize
    K = 2 * h + 1
    Nb, C, HW = o_ref.shape

    # Hoisted: o * eps^2 is reused by every softmax call.
    o_eps = o_ref[...] * eps2                          # (Nb, C, HW) f32

    # Hoisted per-pixel softmax shift (softmax is shift-invariant; since
    # |lam*eps^2*q| <= 5 the shifted exponent stays within f32 range, so no
    # per-iteration cross-sublane max-reduce is needed).
    m0 = jnp.max(o_eps, axis=1, keepdims=True)         # (Nb, 1, HW)

    col = ids_ref[0]                                   # (1, HW) int32
    row = ids_ref[1]                                   # (1, HW) int32

    # Per-tap weight planes (per-class scalar factor x boundary keep-mask),
    # built ONCE per grid step and reused by every iteration.  The masks make
    # the circular wrap of pltpu.roll harmless at image borders.
    row_planes, col_planes = [], []
    for t in range(K):
        s = t - h
        rmask = jnp.logical_and(col >= -s, col < W - s)            # (1, HW)
        cmask = jnp.logical_and(row >= -s, row < H - s)            # (1, HW)
        row_planes.append(jnp.where(rmask, fac_ref[t], 0.0))       # (C, HW)
        col_planes.append(jnp.where(cmask, fac_ref[K + t], 0.0))   # (C, HW)

    def softmax_classes(z):
        # softmax over the class axis (axis 1) == nn.Softmax2d (fixed shift m0)
        e = jnp.exp(z - m0)
        ssum = jnp.sum(e, axis=1, keepdims=True)
        r = pl.reciprocal(ssum, approx=True)            # EUP vrcp (free slot)
        r = r * (2.0 - ssum * r)                        # one Newton step -> ~f32 exact
        return e * r

    def sep_pass(x, planes, step):
        # One separable 1-D pass: K taps, each an in-register lane rotation of
        # the whole tile by s*step lanes (s = -h..h) times its masked weight
        # plane.  roll(x, -d)[i] == x[i + d]; masked lanes never see wrapped data.
        acc = x * planes[h]                             # centre tap, no shift
        for t in range(K):
            s = t - h
            if s != 0:
                shift = (-s * step) % HW                # static, non-negative
                acc = acc + pltpu.roll(x, shift=shift, axis=2) * planes[t]
        return acc

    u0 = softmax_classes(o_eps)

    def body(_, u):
        v = 1.0 - 2.0 * u
        t_w = sep_pass(v, row_planes, 1)                # pass along W
        q = sep_pass(t_w, col_planes, W)                # pass along H
        return softmax_classes(o_eps - lam_eps2 * q)

    u = jax.lax.fori_loop(0, nb_iterations, body, u0)
    u_ref[...] = u.astype(u_ref.dtype)


# ----------------------------------------------------------------------------
# Wrapper
# ----------------------------------------------------------------------------
def std_layer_forward(o, nb_classes, nb_iterations=10, nb_kerhalfsize=3,
                      batch_block=None):
    N, C, H, W = o.shape
    assert C == nb_classes
    h = nb_kerhalfsize
    K = 2 * h + 1
    HW = H * W

    # deterministic parameter init, identical to the PyTorch module
    nb_sigma = jnp.full((nb_classes,), 10.0, jnp.float32)
    entropy_epsilon = jnp.float32(1.0)
    lam = jnp.float32(5.0)
    params = jnp.array([entropy_epsilon ** 2.0, lam], jnp.float32)

    # Separable per-class 1-D Gaussian factors, packed as (2K, C, 1):
    # slabs [0:K) drive the row (along-W) pass, slabs [K:2K) the column pass.
    kx, ky = std_gauss_factors(nb_sigma, h)             # (C, K), (C, K)
    fac = jnp.concatenate([kx.T, ky.T], axis=0)[:, :, None].astype(jnp.float32)

    # int32 column / row index of every flattened pixel (boundary masks are
    # rebuilt from these inside the kernel; no (K, C, HW) planes in HBM/VMEM).
    idx = jnp.arange(HW, dtype=jnp.int32)
    ids = jnp.stack([idx % W, idx // W])[:, None, :].astype(jnp.int32)   # (2,1,HW)

    # Lane-dense layout: flatten spatial dims so the minor dim is H*W.
    o_flat = o.astype(jnp.float32).reshape(N, C, HW)

    # Batch block: ~8 MiB per block (amortizes per-grid-step overhead) but
    # capped at N//2 so the "parallel" batch grid feeds both v7x TensorCores.
    if batch_block is None:
        per_sample = C * HW * 4
        batch_block = max(1, min(N, (8 << 20) // max(per_sample, 1)))
        if N >= 2:
            batch_block = min(batch_block, max(1, N // 2))
        while N % batch_block != 0:
            batch_block -= 1
    Nb = batch_block
    grid = (N // Nb,)

    # o and u blocks are double-buffered by the pipeline; weights/ids are tiny.
    block_bytes = Nb * C * HW * 4
    vmem_limit = int(min(48 << 20, max(16 << 20, 4 * block_bytes + (2 << 20))))

    kernel = functools.partial(std_layer_kernel,
                               nb_iterations=nb_iterations,
                               halfsize=h, H=H, W=W)

    u_flat = pl.pallas_call(
        kernel,
        out_shape=jax.ShapeDtypeStruct((N, C, HW), jnp.float32),
        grid=grid,
        in_specs=[
            pl.BlockSpec(memory_space=pltpu.SMEM),                   # params
            pl.BlockSpec((Nb, C, HW), lambda n: (n, 0, 0)),          # o (flat)
            pl.BlockSpec((2 * K, C, 1), lambda n: (0, 0, 0)),        # factors
            pl.BlockSpec((2, 1, HW), lambda n: (0, 0, 0)),           # col/row ids
        ],
        out_specs=pl.BlockSpec((Nb, C, HW), lambda n: (n, 0, 0)),
        compiler_params=pltpu.CompilerParams(
            dimension_semantics=("parallel",),                       # 2 TCs on v7x
            vmem_limit_bytes=vmem_limit),
    )(params, o_flat, fac, ids)

    return u_flat.reshape(N, C, H, W)


# ----------------------------------------------------------------------------
# Pure-JAX reference (correctness check only) — uses the full 2-D kernel.
# ----------------------------------------------------------------------------
def std_layer_reference(o, nb_classes, nb_iterations=10, nb_kerhalfsize=3):
    h = nb_kerhalfsize
    C = nb_classes
    nb_sigma = jnp.full((C,), 10.0, jnp.float32)
    eps2 = jnp.float32(1.0) ** 2.0
    lam = jnp.float32(5.0)
    ker = std_gauss_kernel_2d(nb_sigma, h)[:, None, :, :]        # (C,1,K,K) OIHW
    u = jax.nn.softmax(o * eps2, axis=1)
    for _ in range(nb_iterations):
        q = jax.lax.conv_general_dilated(
            1.0 - 2.0 * u, ker, window_strides=(1, 1),
            padding=[(h, h), (h, h)],
            dimension_numbers=("NCHW", "OIHW", "NCHW"),
            feature_group_count=C)
        u = jax.nn.softmax((o - lam * q) * eps2, axis=1)
    return u


if __name__ == "__main__":
    nb_classes = 4
    N, C, H, W = 2, nb_classes, 16, 16

    key = jax.random.PRNGKey(0)
    o = jax.random.normal(key, (N, C, H, W), jnp.float32)

    u = std_layer_forward(o, nb_classes, nb_iterations=10, nb_kerhalfsize=3)
    u = jax.block_until_ready(u)

    u_ref = std_layer_reference(o, nb_classes, nb_iterations=10, nb_kerhalfsize=3)

    assert u.shape == (N, C, H, W)
    assert bool(jnp.all(jnp.isfinite(u)))
    # channel softmax -> class probabilities sum to 1
    assert jnp.allclose(jnp.sum(u, axis=1), 1.0, atol=1e-5)
    assert jnp.allclose(u, u_ref, atol=5e-5, rtol=5e-5)

    print("KERNEL_OK")
</pallas_src>

<mosaic_0001>
module attributes {stable_mosaic.version = 11 : i64} {
  func.func @std_layer_kernel(%arg0: i32, %arg1: memref<2xf32, #tpu.memory_space<smem>>, %arg2: memref<1x4x256xf32, #tpu.memory_space<vmem>>, %arg3: memref<14x4x1xf32, #tpu.memory_space<vmem>>, %arg4: memref<2x1x256xi32, #tpu.memory_space<vmem>>, %arg5: memref<1x4x256xf32, #tpu.memory_space<vmem>>) attributes {dimension_semantics = [#tpu.dimension_semantics<parallel>], iteration_bounds = array<i64: 2>, scalar_prefetch = 0 : i64, scratch_operands = 0 : i64, tpu.core_type = #tpu.core_type<tc>, window_params = [{transform_indices = @transform_0, window_bounds = array<i64: 2>}, {transform_indices = @transform_1, window_bounds = array<i64: 1, 4, 256>}, {pipeline_mode = #tpu.pipeline_mode<synchronous>, transform_indices = @transform_2, window_bounds = array<i64: 14, 4, 1>}, {pipeline_mode = #tpu.pipeline_mode<synchronous>, transform_indices = @transform_3, window_bounds = array<i64: 2, 1, 256>}, {transform_indices = @transform_4, window_bounds = array<i64: 1, 4, 256>}]} {
    %c0 = arith.constant 0 : index
    %0 = memref.load %arg1[%c0] : memref<2xf32, #tpu.memory_space<smem>>
    %c1 = arith.constant 1 : index
    %1 = memref.load %arg1[%c1] : memref<2xf32, #tpu.memory_space<smem>>
    %c0_0 = arith.constant 0 : index
    %2 = memref.load %arg1[%c0_0] : memref<2xf32, #tpu.memory_space<smem>>
    %3 = arith.mulf %1, %2 : f32
    %c0_1 = arith.constant 0 : index
    %c0_2 = arith.constant 0 : index
    %c0_3 = arith.constant 0 : index
    %4 = vector.load %arg2[%c0_1, %c0_2, %c0_3] : memref<1x4x256xf32, #tpu.memory_space<vmem>>, vector<1x4x256xf32>
    %5 = vector.broadcast %0 : f32 to vector<1x4x256xf32>
    %6 = arith.mulf %4, %5 : vector<1x4x256xf32>
    %cst = arith.constant dense<0xFF800000> : vector<1x256xf32>
    %7 = vector.multi_reduction <maximumf>, %6, %cst [1] : vector<1x4x256xf32> to vector<1x256xf32>
    %8 = vector.shape_cast %7 : vector<1x256xf32> to vector<1x1x256xf32>
    %c0_4 = arith.constant 0 : index
    %c0_5 = arith.constant 0 : index
    %c0_6 = arith.constant 0 : index
    %9 = vector.load %arg4[%c0_4, %c0_5, %c0_6] : memref<2x1x256xi32, #tpu.memory_space<vmem>>, vector<1x1x256xi32>
    %10 = vector.shape_cast %9 : vector<1x1x256xi32> to vector<1x256xi32>
    %c1_7 = arith.constant 1 : index
    %c0_8 = arith.constant 0 : index
    %c0_9 = arith.constant 0 : index
    %11 = vector.load %arg4[%c1_7, %c0_8, %c0_9] : memref<2x1x256xi32, #tpu.memory_space<vmem>>, vector<1x1x256xi32>
    %12 = vector.shape_cast %11 : vector<1x1x256xi32> to vector<1x256xi32>
    %c3_i32 = arith.constant 3 : i32
    %13 = vector.broadcast %c3_i32 : i32 to vector<1x256xi32>
    %14 = arith.cmpi sge, %10, %13 : vector<1x256xi32>
    %c19_i32 = arith.constant 19 : i32
    %15 = vector.broadcast %c19_i32 : i32 to vector<1x256xi32>
    %16 = arith.cmpi slt, %10, %15 : vector<1x256xi32>
    %17 = arith.andi %14, %16 : vector<1x256xi1>
    %c3_i32_10 = arith.constant 3 : i32
    %18 = vector.broadcast %c3_i32_10 : i32 to vector<1x256xi32>
    %19 = arith.cmpi sge, %12, %18 : vector<1x256xi32>
    %c19_i32_11 = arith.constant 19 : i32
    %20 = vector.broadcast %c19_i32_11 : i32 to vector<1x256xi32>
    %21 = arith.cmpi slt, %12, %20 : vector<1x256xi32>
    %22 = arith.andi %19, %21 : vector<1x256xi1>
    %c0_12 = arith.constant 0 : index
    %c0_13 = arith.constant 0 : index
    %c0_14 = arith.constant 0 : index
    %23 = vector.load %arg3[%c0_12, %c0_13, %c0_14] : memref<14x4x1xf32, #tpu.memory_space<vmem>>, vector<1x4x1xf32>
    %24 = vector.shape_cast %23 : vector<1x4x1xf32> to vector<4x1xf32>
    %cst_15 = arith.constant 0.000000e+00 : f32
    %25 = vector.shape_cast %17 : vector<1x256xi1> to vector<1x256xi1>
    %26 = vector.broadcast %25 : vector<1x256xi1> to vector<4x256xi1>
    %27 = vector.shape_cast %24 : vector<4x1xf32> to vector<4x1xf32>
    %28 = vector.broadcast %27 : vector<4x1xf32> to vector<4x256xf32>
    %29 = vector.broadcast %cst_15 : f32 to vector<4x256xf32>
    %30 = arith.select %26, %28, %29 : vector<4x256xi1>, vector<4x256xf32>
    %c7 = arith.constant 7 : index
    %c0_16 = arith.constant 0 : index
    %c0_17 = arith.constant 0 : index
    %31 = vector.load %arg3[%c7, %c0_16, %c0_17] : memref<14x4x1xf32, #tpu.memory_space<vmem>>, vector<1x4x1xf32>
    %32 = vector.shape_cast %31 : vector<1x4x1xf32> to vector<4x1xf32>
    %cst_18 = arith.constant 0.000000e+00 : f32
    %33 = vector.shape_cast %22 : vector<1x256xi1> to vector<1x256xi1>
    %34 = vector.broadcast %33 : vector<1x256xi1> to vector<4x256xi1>
    %35 = vector.shape_cast %32 : vector<4x1xf32> to vector<4x1xf32>
    %36 = vector.broadcast %35 : vector<4x1xf32> to vector<4x256xf32>
    %37 = vector.broadcast %cst_18 : f32 to vector<4x256xf32>
    %38 = arith.select %34, %36, %37 : vector<4x256xi1>, vector<4x256xf32>
    %c2_i32 = arith.constant 2 : i32
    %39 = vector.broadcast %c2_i32 : i32 to vector<1x256xi32>
    %40 = arith.cmpi sge, %10, %39 : vector<1x256xi32>
    %c18_i32 = arith.constant 18 : i32
    %41 = vector.broadcast %c18_i32 : i32 to vector<1x256xi32>
    %42 = arith.cmpi slt, %10, %41 : vector<1x256xi32>
    %43 = arith.andi %40, %42 : vector<1x256xi1>
    %c2_i32_19 = arith.constant 2 : i32
    %44 = vector.broadcast %c2_i32_19 : i32 to vector<1x256xi32>
    %45 = arith.cmpi sge, %12, %44 : vector<1x256xi32>
    %c18_i32_20 = arith.constant 18 : i32
    %46 = vector.broadcast %c18_i32_20 : i32 to vector<1x256xi32>
    %47 = arith.cmpi slt, %12, %46 : vector<1x256xi32>
    %48 = arith.andi %45, %47 : vector<1x256xi1>
    %c1_21 = arith.constant 1 : index
    %c0_22 = arith.constant 0 : index
    %c0_23 = arith.constant 0 : index
    %49 = vector.load %arg3[%c1_21, %c0_22, %c0_23] : memref<14x4x1xf32, #tpu.memory_space<vmem>>, vector<1x4x1xf32>
    %50 = vector.shape_cast %49 : vector<1x4x1xf32> to vector<4x1xf32>
    %cst_24 = arith.constant 0.000000e+00 : f32
    %51 = vector.shape_cast %43 : vector<1x256xi1> to vector<1x256xi1>
    %52 = vector.broadcast %51 : vector<1x256xi1> to vector<4x256xi1>
    %53 = vector.shape_cast %50 : vector<4x1xf32> to vector<4x1xf32>
    %54 = vector.broadcast %53 : vector<4x1xf32> to vector<4x256xf32>
    %55 = vector.broadcast %cst_24 : f32 to vector<4x256xf32>
    %56 = arith.select %52, %54, %55 : vector<4x256xi1>, vector<4x256xf32>
    %c8 = arith.constant 8 : index
    %c0_25 = arith.constant 0 : index
    %c0_26 = arith.constant 0 : index
    %57 = vector.load %arg3[%c8, %c0_25, %c0_26] : memref<14x4x1xf32, #tpu.memory_space<vmem>>, vector<1x4x1xf32>
    %58 = vector.shape_cast %57 : vector<1x4x1xf32> to vector<4x1xf32>
    %cst_27 = arith.constant 0.000000e+00 : f32
    %59 = vector.shape_cast %48 : vector<1x256xi1> to vector<1x256xi1>
    %60 = vector.broadcast %59 : vector<1x256xi1> to vector<4x256xi1>
    %61 = vector.shape_cast %58 : vector<4x1xf32> to vector<4x1xf32>
    %62 = vector.broadcast %61 : vector<4x1xf32> to vector<4x256xf32>
    %63 = vector.broadcast %cst_27 : f32 to vector<4x256xf32>
    %64 = arith.select %60, %62, %63 : vector<4x256xi1>, vector<4x256xf32>
    %c1_i32 = arith.constant 1 : i32
    %65 = vector.broadcast %c1_i32 : i32 to vector<1x256xi32>
    %66 = arith.cmpi sge, %10, %65 : vector<1x256xi32>
    %c17_i32 = arith.constant 17 : i32
    %67 = vector.broadcast %c17_i32 : i32 to vector<1x256xi32>
    %68 = arith.cmpi slt, %10, %67 : vector<1x256xi32>
    %69 = arith.andi %66, %68 : vector<1x256xi1>
    %c1_i32_28 = arith.constant 1 : i32
    %70 = vector.broadcast %c1_i32_28 : i32 to vector<1x256xi32>
    %71 = arith.cmpi sge, %12, %70 : vector<1x256xi32>
    %c17_i32_29 = arith.constant 17 : i32
    %72 = vector.broadcast %c17_i32_29 : i32 to vector<1x256xi32>
    %73 = arith.cmpi slt, %12, %72 : vector<1x256xi32>
    %74 = arith.andi %71, %73 : vector<1x256xi1>
    %c2 = arith.constant 2 : index
    %c0_30 = arith.constant 0 : index
    %c0_31 = arith.constant 0 : index
    %75 = vector.load %arg3[%c2, %c0_30, %c0_31] : memref<14x4x1xf32, #tpu.memory_space<vmem>>, vector<1x4x1xf32>
    %76 = vector.shape_cast %75 : vector<1x4x1xf32> to vector<4x1xf32>
    %cst_32 = arith.constant 0.000000e+00 : f32
    %77 = vector.shape_cast %69 : vector<1x256xi1> to vector<1x256xi1>
    %78 = vector.broadcast %77 : vector<1x256xi1> to vector<4x256xi1>
    %79 = vector.shape_cast %76 : vector<4x1xf32> to vector<4x1xf32>
    %80 = vector.broadcast %79 : vector<4x1xf32> to vector<4x256xf32>
    %81 = vector.broadcast %cst_32 : f32 to vector<4x256xf32>
    %82 = arith.select %78, %80, %81 : vector<4x256xi1>, vector<4x256xf32>
    %c9 = arith.constant 9 : index
    %c0_33 = arith.constant 0 : index
    %c0_34 = arith.constant 0 : index
    %83 = vector.load %arg3[%c9, %c0_33, %c0_34] : memref<14x4x1xf32, #tpu.memory_space<vmem>>, vector<1x4x1xf32>
    %84 = vector.shape_cast %83 : vector<1x4x1xf32> to vector<4x1xf32>
    %cst_35 = arith.constant 0.000000e+00 : f32
    %85 = vector.shape_cast %74 : vector<1x256xi1> to vector<1x256xi1>
    %86 = vector.broadcast %85 : vector<1x256xi1> to vector<4x256xi1>
    %87 = vector.shape_cast %84 : vector<4x1xf32> to vector<4x1xf32>
    %88 = vector.broadcast %87 : vector<4x1xf32> to vector<4x256xf32>
    %89 = vector.broadcast %cst_35 : f32 to vector<4x256xf32>
    %90 = arith.select %86, %88, %89 : vector<4x256xi1>, vector<4x256xf32>
    %c0_i32 = arith.constant 0 : i32
    %91 = vector.broadcast %c0_i32 : i32 to vector<1x256xi32>
    %92 = arith.cmpi sge, %10, %91 : vector<1x256xi32>
    %c16_i32 = arith.constant 16 : i32
    %93 = vector.broadcast %c16_i32 : i32 to vector<1x256xi32>
    %94 = arith.cmpi slt, %10, %93 : vector<1x256xi32>
    %95 = arith.andi %92, %94 : vector<1x256xi1>
    %c0_i32_36 = arith.constant 0 : i32
    %96 = vector.broadcast %c0_i32_36 : i32 to vector<1x256xi32>
    %97 = arith.cmpi sge, %12, %96 : vector<1x256xi32>
    %c16_i32_37 = arith.constant 16 : i32
    %98 = vector.broadcast %c16_i32_37 : i32 to vector<1x256xi32>
    %99 = arith.cmpi slt, %12, %98 : vector<1x256xi32>
    %100 = arith.andi %97, %99 : vector<1x256xi1>
    %c3 = arith.constant 3 : index
    %c0_38 = arith.constant 0 : index
    %c0_39 = arith.constant 0 : index
    %101 = vector.load %arg3[%c3, %c0_38, %c0_39] : memref<14x4x1xf32, #tpu.memory_space<vmem>>, vector<1x4x1xf32>
    %102 = vector.shape_cast %101 : vector<1x4x1xf32> to vector<4x1xf32>
    %cst_40 = arith.constant 0.000000e+00 : f32
    %103 = vector.shape_cast %95 : vector<1x256xi1> to vector<1x256xi1>
    %104 = vector.broadcast %103 : vector<1x256xi1> to vector<4x256xi1>
    %105 = vector.shape_cast %102 : vector<4x1xf32> to vector<4x1xf32>
    %106 = vector.broadcast %105 : vector<4x1xf32> to vector<4x256xf32>
    %107 = vector.broadcast %cst_40 : f32 to vector<4x256xf32>
    %108 = arith.select %104, %106, %107 : vector<4x256xi1>, vector<4x256xf32>
    %c10 = arith.constant 10 : index
    %c0_41 = arith.constant 0 : index
    %c0_42 = arith.constant 0 : index
    %109 = vector.load %arg3[%c10, %c0_41, %c0_42] : memref<14x4x1xf32, #tpu.memory_space<vmem>>, vector<1x4x1xf32>
    %110 = vector.shape_cast %109 : vector<1x4x1xf32> to vector<4x1xf32>
    %cst_43 = arith.constant 0.000000e+00 : f32
    %111 = vector.shape_cast %100 : vector<1x256xi1> to vector<1x256xi1>
    %112 = vector.broadcast %111 : vector<1x256xi1> to vector<4x256xi1>
    %113 = vector.shape_cast %110 : vector<4x1xf32> to vector<4x1xf32>
    %114 = vector.broadcast %113 : vector<4x1xf32> to vector<4x256xf32>
    %115 = vector.broadcast %cst_43 : f32 to vector<4x256xf32>
    %116 = arith.select %112, %114, %115 : vector<4x256xi1>, vector<4x256xf32>
    %c-1_i32 = arith.constant -1 : i32
    %117 = vector.broadcast %c-1_i32 : i32 to vector<1x256xi32>
    %118 = arith.cmpi sge, %10, %117 : vector<1x256xi32>
    %c15_i32 = arith.constant 15 : i32
    %119 = vector.broadcast %c15_i32 : i32 to vector<1x256xi32>
    %120 = arith.cmpi slt, %10, %119 : vector<1x256xi32>
    %121 = arith.andi %118, %120 : vector<1x256xi1>
    %c-1_i32_44 = arith.constant -1 : i32
    %122 = vector.broadcast %c-1_i32_44 : i32 to vector<1x256xi32>
    %123 = arith.cmpi sge, %12, %122 : vector<1x256xi32>
    %c15_i32_45 = arith.constant 15 : i32
    %124 = vector.broadcast %c15_i32_45 : i32 to vector<1x256xi32>
    %125 = arith.cmpi slt, %12, %124 : vector<1x256xi32>
    %126 = arith.andi %123, %125 : vector<1x256xi1>
    %c4 = arith.constant 4 : index
    %c0_46 = arith.constant 0 : index
    %c0_47 = arith.constant 0 : index
    %127 = vector.load %arg3[%c4, %c0_46, %c0_47] : memref<14x4x1xf32, #tpu.memory_space<vmem>>, vector<1x4x1xf32>
    %128 = vector.shape_cast %127 : vector<1x4x1xf32> to vector<4x1xf32>
    %cst_48 = arith.constant 0.000000e+00 : f32
    %129 = vector.shape_cast %121 : vector<1x256xi1> to vector<1x256xi1>
    %130 = vector.broadcast %129 : vector<1x256xi1> to vector<4x256xi1>
    %131 = vector.shape_cast %128 : vector<4x1xf32> to vector<4x1xf32>
    %132 = vector.broadcast %131 : vector<4x1xf32> to vector<4x256xf32>
    %133 = vector.broadcast %cst_48 : f32 to vector<4x256xf32>
    %134 = arith.select %130, %132, %133 : vector<4x256xi1>, vector<4x256xf32>
    %c11 = arith.constant 11 : index
    %c0_49 = arith.constant 0 : index
    %c0_50 = arith.constant 0 : index
    %135 = vector.load %arg3[%c11, %c0_49, %c0_50] : memref<14x4x1xf32, #tpu.memory_space<vmem>>, vector<1x4x1xf32>
    %136 = vector.shape_cast %135 : vector<1x4x1xf32> to vector<4x1xf32>
    %cst_51 = arith.constant 0.000000e+00 : f32
    %137 = vector.shape_cast %126 : vector<1x256xi1> to vector<1x256xi1>
    %138 = vector.broadcast %137 : vector<1x256xi1> to vector<4x256xi1>
    %139 = vector.shape_cast %136 : vector<4x1xf32> to vector<4x1xf32>
    %140 = vector.broadcast %139 : vector<4x1xf32> to vector<4x256xf32>
    %141 = vector.broadcast %cst_51 : f32 to vector<4x256xf32>
    %142 = arith.select %138, %140, %141 : vector<4x256xi1>, vector<4x256xf32>
    %c-2_i32 = arith.constant -2 : i32
    %143 = vector.broadcast %c-2_i32 : i32 to vector<1x256xi32>
    %144 = arith.cmpi sge, %10, %143 : vector<1x256xi32>
    %c14_i32 = arith.constant 14 : i32
    %145 = vector.broadcast %c14_i32 : i32 to vector<1x256xi32>
    %146 = arith.cmpi slt, %10, %145 : vector<1x256xi32>
    %147 = arith.andi %144, %146 : vector<1x256xi1>
    %c-2_i32_52 = arith.constant -2 : i32
    %148 = vector.broadcast %c-2_i32_52 : i32 to vector<1x256xi32>
    %149 = arith.cmpi sge, %12, %148 : vector<1x256xi32>
    %c14_i32_53 = arith.constant 14 : i32
    %150 = vector.broadcast %c14_i32_53 : i32 to vector<1x256xi32>
    %151 = arith.cmpi slt, %12, %150 : vector<1x256xi32>
    %152 = arith.andi %149, %151 : vector<1x256xi1>
    %c5 = arith.constant 5 : index
    %c0_54 = arith.constant 0 : index
    %c0_55 = arith.constant 0 : index
    %153 = vector.load %arg3[%c5, %c0_54, %c0_55] : memref<14x4x1xf32, #tpu.memory_space<vmem>>, vector<1x4x1xf32>
    %154 = vector.shape_cast %153 : vector<1x4x1xf32> to vector<4x1xf32>
    %cst_56 = arith.constant 0.000000e+00 : f32
    %155 = vector.shape_cast %147 : vector<1x256xi1> to vector<1x256xi1>
    %156 = vector.broadcast %155 : vector<1x256xi1> to vector<4x256xi1>
    %157 = vector.shape_cast %154 : vector<4x1xf32> to vector<4x1xf32>
    %158 = vector.broadcast %157 : vector<4x1xf32> to vector<4x256xf32>
    %159 = vector.broadcast %cst_56 : f32 to vector<4x256xf32>
    %160 = arith.select %156, %158, %159 : vector<4x256xi1>, vector<4x256xf32>
    %c12 = arith.constant 12 : index
    %c0_57 = arith.constant 0 : index
    %c0_58 = arith.constant 0 : index
    %161 = vector.load %arg3[%c12, %c0_57, %c0_58] : memref<14x4x1xf32, #tpu.memory_space<vmem>>, vector<1x4x1xf32>
    %162 = vector.shape_cast %161 : vector<1x4x1xf32> to vector<4x1xf32>
    %cst_59 = arith.constant 0.000000e+00 : f32
    %163 = vector.shape_cast %152 : vector<1x256xi1> to vector<1x256xi1>
    %164 = vector.broadcast %163 : vector<1x256xi1> to vector<4x256xi1>
    %165 = vector.shape_cast %162 : vector<4x1xf32> to vector<4x1xf32>
    %166 = vector.broadcast %165 : vector<4x1xf32> to vector<4x256xf32>
    %167 = vector.broadcast %cst_59 : f32 to vector<4x256xf32>
    %168 = arith.select %164, %166, %167 : vector<4x256xi1>, vector<4x256xf32>
    %c-3_i32 = arith.constant -3 : i32
    %169 = vector.broadcast %c-3_i32 : i32 to vector<1x256xi32>
    %170 = arith.cmpi sge, %10, %169 : vector<1x256xi32>
    %c13_i32 = arith.constant 13 : i32
    %171 = vector.broadcast %c13_i32 : i32 to vector<1x256xi32>
    %172 = arith.cmpi slt, %10, %171 : vector<1x256xi32>
    %173 = arith.andi %170, %172 : vector<1x256xi1>
    %c-3_i32_60 = arith.constant -3 : i32
    %174 = vector.broadcast %c-3_i32_60 : i32 to vector<1x256xi32>
    %175 = arith.cmpi sge, %12, %174 : vector<1x256xi32>
    %c13_i32_61 = arith.constant 13 : i32
    %176 = vector.broadcast %c13_i32_61 : i32 to vector<1x256xi32>
    %177 = arith.cmpi slt, %12, %176 : vector<1x256xi32>
    %178 = arith.andi %175, %177 : vector<1x256xi1>
    %c6 = arith.constant 6 : index
    %c0_62 = arith.constant 0 : index
    %c0_63 = arith.constant 0 : index
    %179 = vector.load %arg3[%c6, %c0_62, %c0_63] : memref<14x4x1xf32, #tpu.memory_space<vmem>>, vector<1x4x1xf32>
    %180 = vector.shape_cast %179 : vector<1x4x1xf32> to vector<4x1xf32>
    %cst_64 = arith.constant 0.000000e+00 : f32
    %181 = vector.shape_cast %173 : vector<1x256xi1> to vector<1x256xi1>
    %182 = vector.broadcast %181 : vector<1x256xi1> to vector<4x256xi1>
    %183 = vector.shape_cast %180 : vector<4x1xf32> to vector<4x1xf32>
    %184 = vector.broadcast %183 : vector<4x1xf32> to vector<4x256xf32>
    %185 = vector.broadcast %cst_64 : f32 to vector<4x256xf32>
    %186 = arith.select %182, %184, %185 : vector<4x256xi1>, vector<4x256xf32>
    %c13 = arith.constant 13 : index
    %c0_65 = arith.constant 0 : index
    %c0_66 = arith.constant 0 : index
    %187 = vector.load %arg3[%c13, %c0_65, %c0_66] : memref<14x4x1xf32, #tpu.memory_space<vmem>>, vector<1x4x1xf32>
    %188 = vector.shape_cast %187 : vector<1x4x1xf32> to vector<4x1xf32>
    %cst_67 = arith.constant 0.000000e+00 : f32
    %189 = vector.shape_cast %178 : vector<1x256xi1> to vector<1x256xi1>
    %190 = vector.broadcast %189 : vector<1x256xi1> to vector<4x256xi1>
    %191 = vector.shape_cast %188 : vector<4x1xf32> to vector<4x1xf32>
    %192 = vector.broadcast %191 : vector<4x1xf32> to vector<4x256xf32>
    %193 = vector.broadcast %cst_67 : f32 to vector<4x256xf32>
    %194 = arith.select %190, %192, %193 : vector<4x256xi1>, vector<4x256xf32>
    %195 = vector.broadcast %8 : vector<1x1x256xf32> to vector<1x4x256xf32>
    %196 = arith.subf %6, %195 : vector<1x4x256xf32>
    %197 = math.exp %196 : vector<1x4x256xf32>
    %cst_68 = arith.constant dense<0.000000e+00> : vector<1x256xf32>
    %198 = vector.multi_reduction <add>, %197, %cst_68 [1] : vector<1x4x256xf32> to vector<1x256xf32>
    %199 = vector.shape_cast %198 : vector<1x256xf32> to vector<1x1x256xf32>
    %200 = tpu.reciprocal %199 {approx = true} : vector<1x1x256xf32> -> vector<1x1x256xf32>
    %201 = arith.mulf %199, %200 : vector<1x1x256xf32>
    %cst_69 = arith.constant 2.000000e+00 : f32
    %202 = vector.broadcast %cst_69 : f32 to vector<1x1x256xf32>
    %203 = arith.subf %202, %201 : vector<1x1x256xf32>
    %204 = arith.mulf %200, %203 : vector<1x1x256xf32>
    %205 = vector.broadcast %204 : vector<1x1x256xf32> to vector<1x4x256xf32>
    %206 = arith.mulf %197, %205 : vector<1x4x256xf32>
    %c0_i32_70 = arith.constant 0 : i32
    %c10_i32 = arith.constant 10 : i32
    %207 = arith.addi %c0_i32_70, %c10_i32 : i32
    %c1_i32_71 = arith.constant 1 : i32
    %208 = scf.for %arg6 = %c0_i32_70 to %207 step %c1_i32_71 iter_args(%arg7 = %206) -> (vector<1x4x256xf32>)  : i32 {
      %cst_75 = arith.constant 2.000000e+00 : f32
      %210 = vector.broadcast %cst_75 : f32 to vector<1x4x256xf32>
      %211 = arith.mulf %210, %arg7 : vector<1x4x256xf32>
      %cst_76 = arith.constant 1.000000e+00 : f32
      %212 = vector.broadcast %cst_76 : f32 to vector<1x4x256xf32>
      %213 = arith.subf %212, %211 : vector<1x4x256xf32>
      %214 = vector.shape_cast %108 : vector<4x256xf32> to vector<1x4x256xf32>
      %215 = arith.mulf %213, %214 : vector<1x4x256xf32>
      %c3_i32_77 = arith.constant 3 : i32
      %216 = tpu.dynamic_rotate %213 by %c3_i32_77 dim 2 : vector<1x4x256xf32>, i32 -> vector<1x4x256xf32>
      %217 = vector.shape_cast %30 : vector<4x256xf32> to vector<1x4x256xf32>
      %218 = arith.mulf %216, %217 : vector<1x4x256xf32>
      %219 = arith.addf %215, %218 : vector<1x4x256xf32>
      %c2_i32_78 = arith.constant 2 : i32
      %220 = tpu.dynamic_rotate %213 by %c2_i32_78 dim 2 : vector<1x4x256xf32>, i32 -> vector<1x4x256xf32>
      %221 = vector.shape_cast %56 : vector<4x256xf32> to vector<1x4x256xf32>
      %222 = arith.mulf %220, %221 : vector<1x4x256xf32>
      %223 = arith.addf %219, %222 : vector<1x4x256xf32>
      %c1_i32_79 = arith.constant 1 : i32
      %224 = tpu.dynamic_rotate %213 by %c1_i32_79 dim 2 : vector<1x4x256xf32>, i32 -> vector<1x4x256xf32>
      %225 = vector.shape_cast %82 : vector<4x256xf32> to vector<1x4x256xf32>
      %226 = arith.mulf %224, %225 : vector<1x4x256xf32>
      %227 = arith.addf %223, %226 : vector<1x4x256xf32>
      %c255_i32 = arith.constant 255 : i32
      %228 = tpu.dynamic_rotate %213 by %c255_i32 dim 2 : vector<1x4x256xf32>, i32 -> vector<1x4x256xf32>
      %229 = vector.shape_cast %134 : vector<4x256xf32> to vector<1x4x256xf32>
      %230 = arith.mulf %228, %229 : vector<1x4x256xf32>
      %231 = arith.addf %227, %230 : vector<1x4x256xf32>
      %c254_i32 = arith.constant 254 : i32
      %232 = tpu.dynamic_rotate %213 by %c254_i32 dim 2 : vector<1x4x256xf32>, i32 -> vector<1x4x256xf32>
      %233 = vector.shape_cast %160 : vector<4x256xf32> to vector<1x4x256xf32>
      %234 = arith.mulf %232, %233 : vector<1x4x256xf32>
      %235 = arith.addf %231, %234 : vector<1x4x256xf32>
      %c253_i32 = arith.constant 253 : i32
      %236 = tpu.dynamic_rotate %213 by %c253_i32 dim 2 : vector<1x4x256xf32>, i32 -> vector<1x4x256xf32>
      %237 = vector.shape_cast %186 : vector<4x256xf32> to vector<1x4x256xf32>
      %238 = arith.mulf %236, %237 : vector<1x4x256xf32>
      %239 = arith.addf %235, %238 : vector<1x4x256xf32>
      %240 = vector.shape_cast %116 : vector<4x256xf32> to vector<1x4x256xf32>
      %241 = arith.mulf %239, %240 : vector<1x4x256xf32>
      %c48_i32 = arith.constant 48 : i32
      %242 = tpu.dynamic_rotate %239 by %c48_i32 dim 2 : vector<1x4x256xf32>, i32 -> vector<1x4x256xf32>
      %243 = vector.shape_cast %38 : vector<4x256xf32> to vector<1x4x256xf32>
      %244 = arith.mulf %242, %243 : vector<1x4x256xf32>
      %245 = arith.addf %241, %244 : vector<1x4x256xf32>
      %c32_i32 = arith.constant 32 : i32
      %246 = tpu.dynamic_rotate %239 by %c32_i32 dim 2 : vector<1x4x256xf32>, i32 -> vector<1x4x256xf32>
      %247 = vector.shape_cast %64 : vector<4x256xf32> to vector<1x4x256xf32>
      %248 = arith.mulf %246, %247 : vector<1x4x256xf32>
      %249 = arith.addf %245, %248 : vector<1x4x256xf32>
      %c16_i32_80 = arith.constant 16 : i32
      %250 = tpu.dynamic_rotate %239 by %c16_i32_80 dim 2 : vector<1x4x256xf32>, i32 -> vector<1x4x256xf32>
      %251 = vector.shape_cast %90 : vector<4x256xf32> to vector<1x4x256xf32>
      %252 = arith.mulf %250, %251 : vector<1x4x256xf32>
      %253 = arith.addf %249, %252 : vector<1x4x256xf32>
      %c240_i32 = arith.constant 240 : i32
      %254 = tpu.dynamic_rotate %239 by %c240_i32 dim 2 : vector<1x4x256xf32>, i32 -> vector<1x4x256xf32>
      %255 = vector.shape_cast %142 : vector<4x256xf32> to vector<1x4x256xf32>
      %256 = arith.mulf %254, %255 : vector<1x4x256xf32>
      %257 = arith.addf %253, %256 : vector<1x4x256xf32>
      %c224_i32 = arith.constant 224 : i32
      %258 = tpu.dynamic_rotate %239 by %c224_i32 dim 2 : vector<1x4x256xf32>, i32 -> vector<1x4x256xf32>
      %259 = vector.shape_cast %168 : vector<4x256xf32> to vector<1x4x256xf32>
      %260 = arith.mulf %258, %259 : vector<1x4x256xf32>
      %261 = arith.addf %257, %260 : vector<1x4x256xf32>
      %c208_i32 = arith.constant 208 : i32
      %262 = tpu.dynamic_rotate %239 by %c208_i32 dim 2 : vector<1x4x256xf32>, i32 -> vector<1x4x256xf32>
      %263 = vector.shape_cast %194 : vector<4x256xf32> to vector<1x4x256xf32>
      %264 = arith.mulf %262, %263 : vector<1x4x256xf32>
      %265 = arith.addf %261, %264 : vector<1x4x256xf32>
      %266 = vector.broadcast %3 : f32 to vector<1x4x256xf32>
      %267 = arith.mulf %266, %265 : vector<1x4x256xf32>
      %268 = arith.subf %6, %267 : vector<1x4x256xf32>
      %269 = vector.broadcast %8 : vector<1x1x256xf32> to vector<1x4x256xf32>
      %270 = arith.subf %268, %269 : vector<1x4x256xf32>
      %271 = math.exp %270 : vector<1x4x256xf32>
      %cst_81 = arith.constant dense<0.000000e+00> : vector<1x256xf32>
      %272 = vector.multi_reduction <add>, %271, %cst_81 [1] : vector<1x4x256xf32> to vector<1x256xf32>
      %273 = vector.shape_cast %272 : vector<1x256xf32> to vector<1x1x256xf32>
      %274 = tpu.reciprocal %273 {approx = true} : vector<1x1x256xf32> -> vector<1x1x256xf32>
      %275 = arith.mulf %273, %274 : vector<1x1x256xf32>
      %cst_82 = arith.constant 2.000000e+00 : f32
      %276 = vector.broadcast %cst_82 : f32 to vector<1x1x256xf32>
      %277 = arith.subf %276, %275 : vector<1x1x256xf32>
      %278 = arith.mulf %274, %277 : vector<1x1x256xf32>
      %279 = vector.broadcast %278 : vector<1x1x256xf32> to vector<1x4x256xf32>
      %280 = arith.mulf %271, %279 : vector<1x4x256xf32>
      scf.yield %280 : vector<1x4x256xf32>
    }
    %c0_72 = arith.constant 0 : index
    %c0_73 = arith.constant 0 : index
    %c0_74 = arith.constant 0 : index
    %209 = vector.load %arg5[%c0_72, %c0_73, %c0_74] : memref<1x4x256xf32, #tpu.memory_space<vmem>>, vector<1x4x256xf32>
    tpu.vector_store %arg5[%c0_72, %c0_73, %c0_74], %208 {strides = array<i32>} : memref<1x4x256xf32, #tpu.memory_space<vmem>>, vector<1x4x256xf32>,
    return
  }
  func.func @transform_0(%arg0: i32) -> i32 {
    %c0_i32 = arith.constant 0 : i32
    %c0_i32_0 = arith.constant 0 : i32
    return %c0_i32 : i32
  }
  func.func @transform_1(%arg0: i32) -> (i32, i32, i32) {
    %c0_i32 = arith.constant 0 : i32
    %c0_i32_0 = arith.constant 0 : i32
    %c0_i32_1 = arith.constant 0 : i32
    return %arg0, %c0_i32, %c0_i32_0 : i32, i32, i32
  }
  func.func @transform_2(%arg0: i32) -> (i32, i32, i32) {
    %c0_i32 = arith.constant 0 : i32
    %c0_i32_0 = arith.constant 0 : i32
    %c0_i32_1 = arith.constant 0 : i32
    %c0_i32_2 = arith.constant 0 : i32
    return %c0_i32, %c0_i32_0, %c0_i32_1 : i32, i32, i32
  }
  func.func @transform_3(%arg0: i32) -> (i32, i32, i32) {
    %c0_i32 = arith.constant 0 : i32
    %c0_i32_0 = arith.constant 0 : i32
    %c0_i32_1 = arith.constant 0 : i32
    %c0_i32_2 = arith.constant 0 : i32
    return %c0_i32, %c0_i32_0, %c0_i32_1 : i32, i32, i32
  }
  func.func @transform_4(%arg0: i32) -> (i32, i32, i32) {
    %c0_i32 = arith.constant 0 : i32
    %c0_i32_0 = arith.constant 0 : i32
    %c0_i32_1 = arith.constant 0 : i32
    return %arg0, %c0_i32, %c0_i32_0 : i32, i32, i32
  }
}

</mosaic_0001>

<bundles_post_ra>
// kernel: tpu_custom_call.1
= control target key start
LH: loop header
LB: loop body
LE: loop exit
PB: predicated region body
PF: predicated region fallthrough
CT: control target
= control target key end

     0   :  { %9 = vsyncpa [#allocation4], 0  ;;  %s1868_s0 = inlined_call_operand.vmem [shape: f32[2], index: 0, kind: input, shape index: {}]   ;;  %s1869_s1 = inlined_call_operand.vmem [shape: f32[2,4,256], index: 1, kind: input, shape index: {}]   ;;  %s1870_s2 = inlined_call_operand.vmem [shape: f32[14,4,1], index: 2, kind: input, shape index: {}]   ;;  %s1871_s3 = inlined_call_operand.vmem [shape: s32[2,1,256], index: 3, kind: input, shape index: {}]   ;;  %s1872_s4 = inlined_call_operand.hbm [shape: f32[2,4,256], index: 4, kind: output, shape index: {}]  }
   0x1   :  { %10 = vsyncpa [#allocation3], 0 }
   0x2   :  { %12 = vsyncpa [#allocation3 + $0x1], 0  ;;  %s1184_s15 = smov 0   ;;  %s1186_s16 = smov 0  }
   0x3   :  { %s1188_s17 = smov 0   ;;  %s1190_s18 = smov 0  }
   0x4 LB: > { %s1205_s19 = sadd.s32 4294967295, %s1134_s18   ;;  %s921_s20 = sadd.s32 4294967294, %s1134_s18   ;;  %s1134_s18 = sphi %s1190_s18, %s2027_s18   ;;  %s1130_s17 = sphi %s1188_s17, %s2026_s17   ;;  %s1126_s16 = sphi %s1186_s16, %s2025_s16   ;;  %s1122_s15 = sphi %s1184_s15, %s2024_s15  }
   0x5   : > { %s1209_s21 = sadd.s32 1, %s1134_s18   ;;  %s114_s22 = sadd.s32 1, %s1130_s17 }
   0x6   : > { %s111_s23 = ssub.s32 %s1134_s18, %s1209_s21  ;;  %p124_p0 = scmp.ne.s32.totalorder %s1130_s17, %s1126_s16 }
   0x7   : > { %p112_p1 = scmp.eq.s32.totalorder %s111_s23, 0  ;;  %p125_p2 = scmp.eq.s32.totalorder %s1205_s19, 1 }
   0x8   : > { %p130_p3 = scmp.ne.s32.totalorder %s1126_s16, %s1122_s15  ;;  %p131_p4 = scmp.eq.s32.totalorder %s921_s20, 1 }
   0x9   : > { %s1220_s24 = scalar_select %p112_p1, %s1130_s17, %s114_s22  }
   0xa   : > { %p1222_p5 = por %p125_p2, %p124_p0  ;;  %p1226_p6 = por %p131_p4, %p130_p3 }
   0xb   : > { %p922_p7 = scmp.ge.s32.totalorder %s1134_s18, 1  ;;  %p138_p8 = scmp.lt.s32.totalorder %s1134_s18, 3 }
   0xc   : > { %p966_p9 = scmp.eq.s32.totalorder %s1205_s19, 0  ;;  %s151_s30 = sshll.u32 %s1868_s0, 4  ;;  %s152_s30 = int_to_ptr.vmem [resolvable:$true] %s151_s30 }
   0xd   : > { %p1233_p10 = pnand %p922_p7, %p138_p8  ;;  %s1045_s5 = scalar_lea.vmem %s152_s30, 16 }
   0xe   : > { %p1046_p13 = scmp.ne.s32.totalorder %s152_s30, %s1045_s5  ;;  %p1053_p3 = scmp.lt.s32.totalorder %s152_s30, %s152_s30 }
   0xf   : > { %p958_p11 = pneg %p1233_p10  ;;  %p1054_p4 = scmp.lt.s32.totalorder %s1045_s5, %s1045_s5 }
  0x11   : > { %p959_p12 = pnand %p966_p9, %p958_p11  ;;  %p1055_p7 = por %p1054_p4, %p1053_p3 }
  0x13   : > { %p1047_p0 = pneg %p959_p12 }
  0x15   : > { %p1048_p1 = pnand %p1047_p0, %p1046_p13 }
  0x17   : > { %p1049_p2 = pneg %p1048_p1 }
  0x19   : > { %p1056_p8 = pnand %p1055_p7, %p1049_p2 }
  0x1b   : > { %1059 = shalt.err (!%p1056_p8)
}
  0x1c   : > { %s1144_s6 = smov [#allocation2]   ;;  %178 = sbr.rel (%p1233_p10) target bundleno = 552 (0x228), region = 36 }
  0x1d   : > { %961 = dma.vmem_to_smem (!%p959_p12), %s152_s30, 16, %s1144_s6, [#allocation4]  }
  0x23   : > { %1113 = dma.done.wait (%p966_p9), [#allocation4], 16  }
  0x24   : > { %1115 = vsyncadd (%p966_p9), [#allocation4], 4294967280 }
  0x25   : > { %184 = sfence }
  0x26   : > { %v933_v0 = vld [vmem:[%s1870_s2 + $0x4] sm:$0xf]  ;;  %v243_v1 = vld [vmem:[%s1870_s2] sm:$0xf]  ;;  %v1145_v2 = vmov 0   ;;  %p205_p9 = scmp.lt.s32.totalorder %s1205_s19, 1  ;;  %v1889_v62 = vlaneseq }
  0x27   : > { %1032 = vset.pattern.permute.xlu1 %v1145_v2  ;;  %1031 = vset.pattern.permute.xlu0 %v1145_v2  ;;  %v934_v3 = vld [vmem:[%s1870_s2 + $0x20] sm:$0xf]  ;;  %v932_v4 = vld [vmem:[%s1870_s2 + $0x1c] sm:$0xf]  ;;  %v936_v5 = vld [vmem:[%s1870_s2 + $0x24] sm:$0xf] }
  0x28   : > { %303 = vperm.xlu1 %1032, %v933_v0   ;;  %257 = vperm.xlu0 %1031, %v243_v1   ;;  %v935_v6 = vld [vmem:[%s1870_s2 + $0x8] sm:$0xf]  ;;  %v937_v8 = vld [vmem:[%s1870_s2 + $0xc] sm:$0xf]  ;;  %s206_s6 = scalar_select %p205_p9, %s1205_s19, 1  ;;  %vm1873_vm0 = vcmask 1043456  }
  0x29   : > { %v938_v7 = vld [vmem:[%s1870_s2 + $0x28] sm:$0xf]  ;;  %v940_v9 = vld [vmem:[%s1870_s2 + $0x2c] sm:$0xf]  ;;  %v939_v10 = vld [vmem:[%s1870_s2 + $0x10] sm:$0xf] }
  0x2a   : > { %s950_s11 = sshll.u32 %s206_s6, 3  ;;  %s1284_s12 = sld [smem:[#allocation2]]  ;;  %v942_v11 = vld [vmem:[%s1870_s2 + $0x30] sm:$0xf]  ;;  %v941_v12 = vld [vmem:[%s1870_s2 + $0x14] sm:$0xf] }
  0x2b   : > { %s209_s28 = scalar_lea.vmem %s1869_s1, %s950_s11  ;;  %s1295_s29 = sld [smem:[#allocation2 + $0x1]]  ;;  %v944_v13 = vld [vmem:[%s1870_s2 + $0x34] sm:$0xf]  ;;  %v943_v14 = vld [vmem:[%s1870_s2 + $0x18] sm:$0xf]  ;;  %v246_v1 = vshrl.u32 %v1889_v62, 7 }
  0x2c   : > { %323 = vperm.xlu1 %1032, %v934_v3   ;;  %277 = vperm.xlu0 %1031, %v932_v4   ;;  %v213_v15 = vld [vmem:[%s209_s28] sm:$0xff]  ;;  %s202_s8 = sand.u32 1, %s1126_s16   ;;  %s1677_s23 = smov 0  }
  0x2d   : > { %s1306_s9 = sshll.u32 %s202_s8, 3  ;;  %v1329_v63 = vld [vmem:[%s1871_s3] sm:$0x3]  ;;  %v1334_v0 = vld [vmem:[%s1871_s3 + $0x2] sm:$0x3]  ;;  %v1345_v3 = vsub.s32 0, %v246_v1 }
  0x2e   : > { %vm282_vm1 = vcmp.ge.s32.totalorder %v1329_v63, 2  ;;  %vm283_vm2 = vcmp.lt.s32.totalorder %v1329_v63, 18  ;;  %vm237_vm3 = vcmp.ge.s32.totalorder %v1329_v63, 3  ;;  %vm238_vm4 = vcmp.lt.s32.totalorder %v1329_v63, 19  ;;  %s204_s22 = scalar_lea.vmem [#allocation5], %s1306_s9 }
  0x2f   : > { %vm285_vm5 = vcmp.ge.s32.totalorder %v1334_v0, 2  ;;  %vm286_vm6 = vcmp.lt.s32.totalorder %v1334_v0, 18  ;;  %vm284_vm7 = vmand %vm282_vm1, %vm283_vm2  ;;  %vm240_vm8 = vcmp.ge.s32.totalorder %v1334_v0, 3  ;;  %vm241_vm9 = vcmp.lt.s32.totalorder %v1334_v0, 19 }
  0x30   : > { %369 = vperm.xlu1 %1032, %v936_v5   ;;  %349 = vperm.xlu0 %1031, %v935_v6   ;;  %v214_v16 = vstv %s1284_s12  ;;  %vm239_vm10 = vmand %vm237_vm3, %vm238_vm4  ;;  %v1347_v4 = vsub.s32 1, %v246_v1  ;;  %v290_v5 = vsel %vm284_vm7, 1, %v1145_v2  ;;  %vm331_vm13 = vcmp.ge.s32.totalorder %v1334_v0, 1 }
  0x31   : > { %s212_s10 = smul.f32 %s1295_s29, %s1284_s12  ;;  %v1311_v17 = vmul.f32 %v214_v16, %v213_v15  ;;  %vm287_vm11 = vmand %vm285_vm5, %vm286_vm6  ;;  %vm332_vm14 = vcmp.lt.s32.totalorder %v1334_v0, 17  ;;  %v244_v6 = vsel %vm239_vm10, 1, %v1145_v2  ;;  %vm328_vm15 = vcmp.ge.s32.totalorder %v1329_v63, 1 }
  0x32   : > { %vm242_vm12 = vmand %vm240_vm8, %vm241_vm9  ;;  %vm329_vm1 = vcmp.lt.s32.totalorder %v1329_v63, 17  ;;  %vm377_vm2 = vcmp.ge.s32.totalorder %v1334_v0, 0  ;;  %vm378_vm3 = vcmp.lt.s32.totalorder %v1334_v0, 16  ;;  %vm374_vm7 = vcmp.ge.s32.totalorder %v1329_v63, 0 }
  0x33   : > { %v217_v18 = vcombine.high %v1311_v17, %v1311_v17  ;;  %v220_v19 = vsel %vm1873_vm0, %v1311_v17, -inf  ;;  %vm333_vm4 = vmand %vm331_vm13, %vm332_vm14  ;;  %vm375_vm8 = vcmp.lt.s32.totalorder %v1329_v63, 16 }
  0x34   : > { %415 = vperm.xlu1 %1032, %v938_v7   ;;  %395 = vperm.xlu0 %1031, %v937_v8   ;;  %v221_v20 = vrot.slane %v220_v19, 4  ;;  %v310_v7 = vsel %vm287_vm11, 1, %v1145_v2  ;;  %v294_v8 = vrot.slane %v290_v5, %v1345_v3  ;;  %vm330_vm5 = vmand %vm328_vm15, %vm329_vm1 }
  0x35   : > { %v227_v21 = vsel %vm1873_vm0, %v217_v18, -inf  ;;  %vm379_vm6 = vmand %vm377_vm2, %vm378_vm3  ;;  %v356_v18 = vsel %vm333_vm4, 1, %v1145_v2  ;;  %vm423_vm3 = vcmp.ge.s32.totalorder %v1334_v0, 4294967295  ;;  %vm424_vm4 = vcmp.lt.s32.totalorder %v1334_v0, 15 }
  0x36   : > { %v228_v22 = vrot.slane %v227_v21, 4  ;;  %v222_v23 = vmax.f32 %v220_v19, %v221_v20  ;;  %vm1370_vm9 = vcmp.eq.s32.totalorder %v294_v8, 1  ;;  %v336_v20 = vsel %vm330_vm5, 1, %v1145_v2  ;;  %vm376_vm13 = vmand %vm374_vm7, %vm375_vm8 }
  0x37   : > { %vm420_vm5 = vcmp.ge.s32.totalorder %v1329_v63, 4294967295  ;;  %vm467_vm7 = vcmp.lt.s32.totalorder %v1329_v63, 14 }
  0x38   : > { %461 = vperm.xlu1 %1032, %v940_v9   ;;  %441 = vperm.xlu0 %1031, %v939_v10   ;;  %v229_v24 = vmax.f32 %v227_v21, %v228_v22  ;;  %v223_v25 = vrot.slane %v222_v23, 2  ;;  %v264_v9 = vsel %vm242_vm12, 1, %v1145_v2  ;;  %v298_v10 = vrot.slane %v290_v5, %v1347_v4 }
  0x39   : > { %v268_v15 = vrot.slane %v264_v9, %v1345_v3  ;;  %v272_v16 = vrot.slane %v264_v9, %v1347_v4  ;;  %v1903_v21 = vmov 0  ;;  %v1905_v22 = vmov 0 }
  0x3a   : > { %v230_v26 = vrot.slane %v229_v24, 2  ;;  %v224_v27 = vmax.f32 %v222_v23, %v223_v25  ;;  %vm1375_vm10 = vcmp.eq.s32.totalorder %v298_v10, 1  ;;  %v1907_v23 = vmov 0 }
  0x3b   : > { %v1904_v21 = vsel %vm1375_vm10, 4294967295, %v1903_v21  ;;  %v1909_v25 = vmov 0  ;;  %vm1398_vm1 = vcmp.eq.s32.totalorder %v268_v15, 1  ;;  %vm1402_vm2 = vcmp.eq.s32.totalorder %v272_v16, 1 }
  0x3c   : > { %507 = vperm.xlu1 %1032, %v942_v11   ;;  %487 = vperm.xlu0 %1031, %v941_v12   ;;  %v231_v28 = vmax.f32 %v229_v24, %v230_v26  ;;  %v225_v29 = vrot.slane %v224_v27, 1  ;;  %v248_v11 = vrot.slane %v244_v6, %v1345_v3  ;;  %v252_v12 = vrot.slane %v244_v6, %v1347_v4 }
  0x3d   : > { %v402_v24 = vsel %vm379_vm6, 1, %v1145_v2  ;;  %v1911_v26 = vmov 0  ;;  %vm421_vm6 = vcmp.lt.s32.totalorder %v1329_v63, 15  ;;  %v1940_v5 = vmov 0 }
  0x3e   : > { %v232_v30 = vrot.slane %v231_v28, 1  ;;  %v226_v31 = vmax.f32 %v224_v27, %v225_v29  ;;  %vm1379_vm11 = vcmp.eq.s32.totalorder %v248_v11, 1  ;;  %vm1383_vm12 = vcmp.eq.s32.totalorder %v252_v12, 1  ;;  %vm1441_vm8 = vmand %vm420_vm5, %vm421_vm6 }
  0x3f   : > { %v1906_v22 = vsel %vm1379_vm11, 4294967295, %v1905_v22  ;;  %v1908_v23 = vsel %vm1383_vm12, 4294967295, %v1907_v23  ;;  %v360_v27 = vrot.slane %v356_v18, %v1345_v3  ;;  %v1913_v29 = vmov 0 }
  0x40   : > { %553 = vperm.xlu1 %1032, %v944_v13   ;;  %533 = vperm.xlu0 %1031, %v943_v14   ;;  %v233_v32 = vmax.f32 %v231_v28, %v232_v30  ;;  %v314_v13 = vrot.slane %v310_v7, %v1345_v3  ;;  %v318_v14 = vrot.slane %v310_v7, %v1347_v4  ;;  %v1914_v29 = vsel %vm1398_vm1, 4294967295, %v1913_v29 }
  0x41   : > { %v364_v28 = vrot.slane %v356_v18, %v1347_v4  ;;  %v1915_v30 = vmov 0  ;;  %vm1449_vm12 = vcmp.eq.s32.totalorder %v360_v27, 1  ;;  %vm1929_vm6 = vcmp.lt.s32.totalorder %v1334_v0, 14 }
  0x42   : > { %v1318_v33 = vcombine.low %v226_v31, %v233_v32  ;;  %vm1388_vm14 = vcmp.eq.s32.totalorder %v314_v13, 1  ;;  %vm1392_vm15 = vcmp.eq.s32.totalorder %v318_v14, 1  ;;  %v1916_v30 = vsel %vm1402_vm2, 4294967295, %v1915_v30 }
  0x43   : > { %v1910_v25 = vsel %vm1388_vm14, 4294967295, %v1909_v25  ;;  %v1912_v26 = vsel %vm1392_vm15, 4294967295, %v1911_v26  ;;  %v340_v31 = vrot.slane %v336_v20, %v1345_v3  ;;  %v344_v32 = vrot.slane %v336_v20, %v1347_v4 }
  0x44   : > { %v562_v34 = vsub.f32 %v1311_v17, %v1318_v33  ;;  %v428_v6 = vsel %vm1441_vm8, 1, %v1145_v2  ;;  %vm513_vm1 = vcmp.lt.s32.totalorder %v1329_v63, 13 }
  0x45   : > { %vm1461_vm5 = vcmp.eq.s32.totalorder %v344_v32, 1  ;;  %v432_v18 = vrot.slane %v428_v6, %v1345_v3  ;;  %v436_v20 = vrot.slane %v428_v6, %v1347_v4 }
  0x46   : > { %v563_v35 = vmul.f32 1.442695, %v562_v34  ;;  %v406_v34 = vrot.slane %v402_v24, %v1345_v3 }
  0x48   : > { %1033 = vpow2.f32 %v563_v35  ;;  %v382_v35 = vsel %vm376_vm13, 1, %v1145_v2  ;;  %vm1434_vm13 = vmand %vm423_vm3, %vm424_vm4  ;;  %vm1453_vm3 = vcmp.eq.s32.totalorder %v364_v28, 1  ;;  %vm1457_vm4 = vcmp.eq.s32.totalorder %v340_v31, 1 }
  0x49   : > { %vm1487_vm10 = vcmp.eq.s32.totalorder %v406_v34, 1  ;;  %v448_v1 = vsel %vm1434_vm13, 1, %v1145_v2  ;;  %vm512_vm13 = vcmp.ge.s32.totalorder %v1329_v63, 4294967293 }
  0x4a   : > { %v452_v15 = vrot.slane %v448_v1, %v1345_v3  ;;  %v456_v16 = vrot.slane %v448_v1, %v1347_v4  ;;  %vm514_vm8 = vmand %vm512_vm13, %vm513_vm1 }
  0x4b   : > { %v520_v6 = vsel %vm514_vm8, 1, %v1145_v2 }
  0x4c   : > { %vm1573_vm1 = vcmp.eq.s32.totalorder %v456_v16, 1  ;;  %v1956_v16 = vmov 0  ;;  %v524_v12 = vrot.slane %v520_v6, %v1345_v3 }
  0x52   : > { %v1034_v36 = vpop.eup %1033 }
  0x53   : > { %v566_v37 = vcombine.high %v1034_v36, %v1034_v36  ;;  %v568_v38 = vsel %vm1873_vm0, %v1034_v36, 0.0 }
  0x54   : > { %v569_v39 = vrot.slane %v568_v38, 4 }
  0x55   : > { %v575_v40 = vsel %vm1873_vm0, %v566_v37, 0.0  ;;  %vm1930_vm0 = vcmp.ge.s32.totalorder %v1334_v0, 4294967294 }
  0x56   : > { %v570_v41 = vadd.f32 %v569_v39, %v568_v38  ;;  %v576_v42 = vrot.slane %v575_v40, 4  ;;  %vm1469_vm11 = vmand %vm1930_vm0, %vm1929_vm6  ;;  %vm1933_vm0 = vcmp.ge.s32.totalorder %v1329_v63, 4294967294  ;;  %v1948_v63 = vmov 0 }
  0x57   : > { %vm468_vm6 = vmand %vm1933_vm0, %vm467_vm7  ;;  %vm515_vm7 = vcmp.ge.s32.totalorder %v1334_v0, 4294967293  ;;  %vm516_vm0 = vcmp.lt.s32.totalorder %v1334_v0, 13  ;;  %v494_v9 = vsel %vm1469_vm11, 1, %v1145_v2  ;;  %v1949_v63 = vsel %vm1573_vm1, 4294967295, %v1948_v63 }
  0x58   : > { %v571_v43 = vrot.slane %v570_v41, 2  ;;  %v577_v44 = vadd.f32 %v576_v42, %v575_v40  ;;  %v410_v42 = vrot.slane %v402_v24, %v1347_v4  ;;  %v474_v10 = vsel %vm468_vm6, 1, %v1145_v2  ;;  %vm1541_vm11 = vmand %vm515_vm7, %vm516_vm0 }
  0x59   : > { %v498_v31 = vrot.slane %v494_v9, %v1345_v3  ;;  %v502_v32 = vrot.slane %v494_v9, %v1347_v4  ;;  %v478_v34 = vrot.slane %v474_v10, %v1345_v3  ;;  %vm1569_vm6 = vcmp.eq.s32.totalorder %v452_v15, 1 }
  0x5a   : > { %v572_v45 = vadd.f32 %v571_v43, %v570_v41  ;;  %v578_v46 = vrot.slane %v577_v44, 2  ;;  %v386_v43 = vrot.slane %v382_v35, %v1345_v3  ;;  %vm1491_vm14 = vcmp.eq.s32.totalorder %v410_v42, 1 }
  0x5b   : > { %vm1577_vm7 = vcmp.eq.s32.totalorder %v432_v18, 1  ;;  %vm1581_vm0 = vcmp.eq.s32.totalorder %v436_v20, 1  ;;  %v540_v1 = vsel %vm1541_vm11, 1, %v1145_v2  ;;  %vm1593_vm13 = vcmp.eq.s32.totalorder %v498_v31, 1 }
  0x5c   : > { %v573_v47 = vrot.slane %v572_v45, 1  ;;  %v579_v48 = vadd.f32 %v578_v46, %v577_v44  ;;  %vm1495_vm15 = vcmp.eq.s32.totalorder %v386_v43, 1  ;;  %v1954_v15 = vmov 0 }
  0x5d   : > { %v1955_v15 = vsel %vm1593_vm13, 4294967295, %v1954_v15  ;;  %v528_v2 = vrot.slane %v520_v6, %v1347_v4  ;;  %v1964_v6 = vmov 0  ;;  %vm1649_vm13 = vcmp.eq.s32.totalorder %v524_v12, 1 }
  0x5e   : > { %v574_v49 = vadd.f32 %v573_v47, %v572_v45  ;;  %v580_v50 = vrot.slane %v579_v48, 1  ;;  %v390_v45 = vrot.slane %v382_v35, %v1347_v4  ;;  %v482_v35 = vrot.slane %v474_v10, %v1347_v4 }
  0x60   : > { %v581_v51 = vadd.f32 %v580_v50, %v579_v48  ;;  %1035 = vrcp.f32 %v574_v49  ;;  %v1923_v50 = vmov 0  ;;  %vm1502_vm2 = vcmp.eq.s32.totalorder %v390_v45, 1 }
  0x61   : > { %v1924_v50 = vsel %vm1453_vm3, 4294967295, %v1923_v50  ;;  %v1941_v5 = vsel %vm1502_vm2, 4294967295, %v1940_v5  ;;  %v1946_v45 = vmov 0  ;;  %vm1597_vm3 = vcmp.eq.s32.totalorder %v502_v32, 1 }
  0x62   : > { %1037 = vrcp.f32 %v581_v51  ;;  %1942 = vst [vmem:[#allocation8_spill] sm:$0xff] %v1941_v5  ;;  %v1947_v45 = vsel %vm1569_vm6, 4294967295, %v1946_v45  ;;  %v1957_v16 = vsel %vm1597_vm3, 4294967295, %v1956_v16  ;;  %vm1653_vm3 = vcmp.eq.s32.totalorder %v528_v2, 1 }
  0x6a   : > { %v1036_v52 = vpop.eup %1035 }
  0x6b   : > { %v584_v53 = vmul.f32 %v1036_v52, %v574_v49  ;;  %v1921_v49 = vmov 0 }
  0x6c   : > { %v1038_v54 = vpop.eup %1037  ;;  %v1922_v49 = vsel %vm1449_vm12, 4294967295, %v1921_v49  ;;  %vm1601_vm12 = vcmp.eq.s32.totalorder %v478_v34, 1  ;;  %v544_v34 = vrot.slane %v540_v1, %v1345_v3 }
  0x6d   : > { %v585_v55 = vmul.f32 %v1038_v54, %v581_v51  ;;  %v586_v56 = vsub.f32 2.0, %v584_v53 }
  0x6e   : > { %vm1641_vm11 = vcmp.eq.s32.totalorder %v544_v34, 1 }
  0x6f   : > { %v587_v57 = vsub.f32 2.0, %v585_v55  ;;  %v588_v58 = vmul.f32 %v1036_v52, %v586_v56 }
  0x71   : > { %v589_v59 = vmul.f32 %v1038_v54, %v587_v57 }
  0x73   : > { %v592_v60 = vcombine.low %v588_v58, %v589_v59  ;;  %v1934_v58 = vmov 0 }
  0x74   : > { %v1935_v58 = vsel %vm1487_vm10, 4294967295, %v1934_v58  ;;  %vm1605_vm10 = vcmp.eq.s32.totalorder %v482_v35, 1  ;;  %v548_v35 = vrot.slane %v540_v1, %v1347_v4  ;;  %v1962_v4 = vmov 0 }
  0x75   : > { %v1324_v61 = vmul.f32 %v1034_v36, %v592_v60   ;;  %v1938_v60 = vmov 0  ;;  %v1963_v4 = vsel %vm1641_vm11, 4294967295, %v1962_v4 }
  0x76   : > { %v1939_v60 = vsel %vm1495_vm15, 4294967295, %v1938_v60  ;;  %vm1645_vm8 = vcmp.eq.s32.totalorder %v548_v35, 1 }
  0x77   : > { %v1965_v6 = vsel %vm1645_vm8, 4294967295, %v1964_v6 }
  0xa7   : > { %v1412_v36 = vpop.permute.xlu1 %303  ;;  %v1414_v37 = vpop.permute.xlu0 %257 }
  0xab   : > { %v1445_v47 = vpop.permute.xlu1 %323  ;;  %v1447_v48 = vpop.permute.xlu0 %277 }
  0xaf   : > { %v1511_v7 = vpop.permute.xlu1 %369  ;;  %v1513_v8 = vpop.permute.xlu0 %349 }
  0xb0   : > { %1943 = vst [vmem:[#allocation9_spill] sm:$0xff] %v1513_v8 }
  0xb3   : > { %v1545_v27 = vpop.permute.xlu1 %415  ;;  %v1547_v28 = vpop.permute.xlu0 %395 }
  0xb7   : > { %v1589_v9 = vpop.permute.xlu1 %461  ;;  %v1591_v10 = vpop.permute.xlu0 %441 }
  0xbb   : > { %v1625_v11 = vpop.permute.xlu1 %507  ;;  %v1627_v24 = vpop.permute.xlu0 %487 }
  0xbf   : > { %v1657_v0 = vpop.permute.xlu1 %553  ;;  %v1659_v42 = vpop.permute.xlu0 %533 }
  0xc0   : > { %1970 = vst [vmem:[#allocation10_spill] sm:$0xff] %v1657_v0 }
  0xc1 LB: >> { %v1972_v8 = vld [vmem:[#allocation9_spill] sm:$0xff]  ;;  %v602_v35 = vmul.f32 2.0, %v1138_v61  ;;  %s1146_s27 = smov 2   ;;  %s1147_s28 = smov 3   ;;  %v1973_v62 = vlaneseq  ;;  %v1974_v5 = vld [vmem:[#allocation8_spill] sm:$0xff]  ;;  %vm1977_vm15 = vnez %v1939_v60  ;;  %v1979_v38 = vsel %vm1370_vm9, %v1412_v36, 0.0  ;;  %s1142_s23 = sphi %s1677_s23, %s600_s23   ;;  %v1138_v61 = vphi %v1324_v61, %v2023_v61  }
  0xc2   : >> { %s1148_s30 = smov 1   ;;  %s1149_s5 = smov 127   ;;  %vm1975_vm2 = vnez %v1974_v5  ;;  %v1978_v43 = vsel %vm1977_vm15, %v1547_v28, 0.0  ;;  %vm1984_vm15 = vnez %v1908_v23 }
  0xc3   : >> { %v603_v34 = vsub.f32 1.0, %v602_v35  ;;  %s1150_s6 = smov 126   ;;  %s1151_s7 = smov 125   ;;  %v1684_v56 = vand.u32 127, %v1973_v62  ;;  %v1976_v44 = vsel %vm1975_vm2, %v1547_v28, 0.0  ;;  %vm1980_vm2 = vnez %v1904_v21 }
  0xc4   : >> { %v606_v3 = vcombine.low %v1978_v43, %v1976_v44  ;;  %v1981_v39 = vsel %vm1980_vm2, %v1412_v36, 0.0  ;;  %s1152_s11 = smov 48   ;;  %s1153_s13 = smov 32  }
  0xc5   : >> { %628 = vrot.lane.b32.xlu1 %v603_v34, %s1146_s27  ;;  %612 = vrot.lane.b32.xlu0 %v603_v34, %s1147_s28  ;;  %v610_v57 = vcombine.high %v603_v34, %v603_v34  ;;  %vm632_vm8 = vcmp.lt.s32.totalorder %v1684_v56, 2  ;;  %vm646_vm11 = vcmp.lt.s32.totalorder %v1684_v56, 1  ;;  %vm618_vm1 = vcmp.lt.s32.totalorder %v1684_v56, 3  ;;  %s1154_s14 = smov 16   ;;  %s1155_s20 = smov 112  }
  0xc6   : >> { %v608_v31 = vmul.f32 %v606_v3, %v603_v34  ;;  %vm660_vm6 = vcmp.lt.s32.totalorder %v1684_v56, 127  ;;  %vm674_vm2 = vcmp.lt.s32.totalorder %v1684_v56, 126  ;;  %s600_s23 = sadd.s32 1, %s1142_s23  }
  0xc7   : >> { %v1971_v0 = vld [vmem:[#allocation10_spill] sm:$0xff]  ;;  %p597_p10 = scmp.ge.s32.totalorder %s600_s23, 10  }
  0xc8   : > { %s1158_s12 = smov (%p597_p10), [#allocation5]  }
  0xc9   : >> { %642 = vrot.lane.b32.xlu0 %v603_v34, %s1148_s30  ;;  %630 = vrot.lane.b32.xlu1 %v610_v57, %s1146_s27  ;;  %s1156_s27 = smov 96   ;;  %s1064_s29 = sshll.u32 (%p597_p10), %s1158_s12, 4  ;;  %s1065_s29 = int_to_ptr.vmem [resolvable:$false] %s1064_s29 }
  0xcd   : >> { %644 = vrot.lane.b32.xlu1 %v610_v57, %s1148_s30  ;;  %614 = vrot.lane.b32.xlu0 %v610_v57, %s1147_s28  ;;  %s1157_s28 = smov 80   ;;  %s951_s30 = sshll.u32 (%p597_p10), %s1205_s19, 7 }
  0xd1   : >> { %658 = vrot.lane.b32.xlu1 %v610_v57, %s1149_s5  ;;  %656 = vrot.lane.b32.xlu0 %v603_v34, %s1149_s5 }
  0xd5   : >> { %672 = vrot.lane.b32.xlu1 %v610_v57, %s1150_s6  ;;  %670 = vrot.lane.b32.xlu0 %v603_v34, %s1150_s6 }
  0xd9   : >> { %686 = vrot.lane.b32.xlu1 %v610_v57, %s1151_s7  ;;  %684 = vrot.lane.b32.xlu0 %v603_v34, %s1151_s7  ;;  %s1828_s7 = scalar_lea.hbm (%p597_p10), %s1872_s4, %s951_s30 }
 0x137   : >> { %v629_v61 = vpop.permute.xlu1 %628  ;;  %v613_v35 = vpop.permute.xlu0 %612 }
 0x13b   : >> { %v643_v2 = vpop.permute.xlu0 %642  ;;  %v631_v12 = vpop.permute.xlu1 %630 }
 0x13c   : >> { %v633_v57 = vsel %vm632_vm8, %v629_v61, %v631_v12  ;;  %v634_v62 = vsel %vm632_vm8, %v631_v12, %v629_v61  ;;  %vm1982_vm8 = vnez %v1906_v22  ;;  %v1986_v12 = vsel %vm1457_vm4, %v1972_v8, 0.0 }
 0x13d   : >> { %v635_v43 = vmul.f32 %v634_v62, %v1979_v38  ;;  %v636_v44 = vmul.f32 %v633_v57, %v1981_v39  ;;  %v1983_v3 = vsel %vm1982_vm8, %v1414_v37, 0.0  ;;  %vm1994_vm8 = vnez %v1914_v29 }
 0x13f   : >> { %v645_v1 = vpop.permute.xlu1 %644  ;;  %v615_v32 = vpop.permute.xlu0 %614 }
 0x140   : >> { %v647_v14 = vsel %vm646_vm11, %v643_v2, %v645_v1  ;;  %v648_v13 = vsel %vm646_vm11, %v645_v1, %v643_v2  ;;  %v619_v41 = vsel %vm618_vm1, %v613_v35, %v615_v32  ;;  %v620_v40 = vsel %vm618_vm1, %v615_v32, %v613_v35 }
 0x141   : >> { %v621_v34 = vmul.f32 %v620_v40, %v1983_v3  ;;  %v1985_v1 = vsel %vm1984_vm15, %v1414_v37, 0.0  ;;  %v649_v62 = vmul.f32 %v648_v13, %v1986_v12  ;;  %v1987_v2 = vsel %vm1461_vm5, %v1972_v8, 0.0 }
 0x142   : >> { %v622_v32 = vmul.f32 %v619_v41, %v1985_v1  ;;  %v650_v61 = vmul.f32 %v647_v14, %v1987_v2  ;;  %v639_v3 = vcombine.low %v635_v43, %v636_v44  ;;  %v1988_v41 = vsel %vm1577_vm7, %v1591_v10, 0.0 }
 0x143   : >> { %v659_v57 = vpop.permute.xlu1 %658  ;;  %v657_v38 = vpop.permute.xlu0 %656  ;;  %v1989_v13 = vsel %vm1581_vm0, %v1591_v10, 0.0  ;;  %vm688_vm15 = vcmp.lt.s32.totalorder %v1684_v56, 125  ;;  %vm724_vm1 = vcmp.lt.s32.totalorder %v1684_v56, 32  ;;  %vm738_vm11 = vcmp.lt.s32.totalorder %v1684_v56, 16 }
 0x144   : >> { %v625_v35 = vcombine.low %v621_v34, %v622_v32  ;;  %v661_v39 = vsel %vm660_vm6, %v657_v38, %v659_v57  ;;  %v662_v40 = vsel %vm660_vm6, %v659_v57, %v657_v38  ;;  %v653_v14 = vcombine.low %v649_v62, %v650_v61 }
 0x145   : >> { %v663_v1 = vmul.f32 %v661_v39, %v1988_v41  ;;  %v664_v12 = vmul.f32 %v662_v40, %v1989_v13  ;;  %vm710_vm6 = vcmp.lt.s32.totalorder %v1684_v56, 48 }
 0x146   : >> { %v627_v5 = vadd.f32 %v625_v35, %v608_v31  ;;  %v1990_v31 = vsel %vm1601_vm12, %v1627_v24, 0.0  ;;  %v1991_v35 = vsel %vm1605_vm10, %v1627_v24, 0.0 }
 0x147   : >> { %v673_v32 = vpop.permute.xlu1 %672  ;;  %v671_v2 = vpop.permute.xlu0 %670  ;;  %v667_v44 = vcombine.low %v663_v1, %v664_v12  ;;  %v1992_v1 = vsel %vm1649_vm13, %v1659_v42, 0.0 }
 0x148   : >> { %v641_v34 = vadd.f32 %v639_v3, %v627_v5  ;;  %v675_v8 = vsel %vm674_vm2, %v671_v2, %v673_v32  ;;  %v676_v38 = vsel %vm674_vm2, %v673_v32, %v671_v2  ;;  %vm1996_vm2 = vnez %v1916_v30 }
 0x149   : >> { %v677_v39 = vmul.f32 %v675_v8, %v1990_v31  ;;  %v678_v57 = vmul.f32 %v676_v38, %v1991_v35  ;;  %v1993_v8 = vsel %vm1653_vm3, %v1659_v42, 0.0 }
 0x14a   : >> { %v655_v43 = vadd.f32 %v653_v14, %v641_v34 }
 0x14b   : >> { %v681_v5 = vcombine.low %v677_v39, %v678_v57  ;;  %v687_v61 = vpop.permute.xlu1 %686  ;;  %v685_v40 = vpop.permute.xlu0 %684 }
 0x14c   : >> { %v669_v62 = vadd.f32 %v667_v44, %v655_v43  ;;  %v689_v3 = vsel %vm688_vm15, %v685_v40, %v687_v61  ;;  %v690_v41 = vsel %vm688_vm15, %v687_v61, %v685_v40  ;;  %v1995_v61 = vsel %vm1994_vm8, %v1447_v48, 0.0 }
 0x14d   : >> { %v691_v13 = vmul.f32 %v689_v3, %v1992_v1  ;;  %v692_v12 = vmul.f32 %v690_v41, %v1993_v8  ;;  %v1997_v3 = vsel %vm1996_vm2, %v1447_v48, 0.0  ;;  %vm1999_vm15 = vnez %v1935_v58 }
 0x14e   : >> { %v683_v14 = vadd.f32 %v681_v5, %v669_v62  ;;  %v2000_v8 = vsel %vm1999_vm15, %v1545_v27, 0.0  ;;  %vm752_vm8 = vcmp.lt.s32.totalorder %v1684_v56, 112  ;;  %vm2005_vm2 = vnez %v1922_v49 }
 0x14f   : >> { %v695_v34 = vcombine.low %v691_v13, %v692_v12  ;;  %v1998_v13 = vsel %vm1491_vm14, %v1545_v27, 0.0  ;;  %vm2009_vm15 = vnez %v1947_v45 }
 0x150   : >> { %v700_v12 = vcombine.low %v2000_v8, %v1998_v13 }
 0x151   : >> { %v697_v32 = vadd.f32 %v695_v34, %v683_v14 }
 0x153   : >> { %706 = vrot.lane.b32.xlu0 %v697_v32, %s1152_s11  ;;  %v704_v2 = vcombine.high %v697_v32, %v697_v32 }
 0x155   : >> { %708 = vrot.lane.b32.xlu1 %v704_v2, %s1152_s11  ;;  %s842_s11 = sshll.u32 (%p597_p10), %s204_s22, 4  ;;  %s843_s11 = int_to_ptr.vmem [resolvable:$true] %s842_s11 }
 0x156   : > { %s1060_s23 = scalar_lea.vmem (%p597_p10), %s843_s11, 128  ;;  %p1067_p0 = scmp.lt.s32.totalorder (%p597_p10), %s843_s11, %s1065_s29 }
 0x157   : >> { %720 = vrot.lane.b32.xlu0 %v697_v32, %s1153_s13  ;;  %p1061_p11 = scmp.ne.s32.totalorder (%p597_p10), %s843_s11, %s1060_s23 }
 0x159   : >> { %722 = vrot.lane.b32.xlu1 %v704_v2, %s1153_s13  ;;  %s828_s13 = scalar_lea.sflag (%p597_p10), [#allocation3], %s202_s8  ;;  %p1062_p12 = pnand (%p597_p10), %p1061_p11, %p1222_p5 }
 0x15b   : >> { %734 = vrot.lane.b32.xlu0 %v697_v32, %s1154_s14  ;;  %p1063_p13 = pneg (%p597_p10), %p1062_p12 }
 0x15d   : >> { %736 = vrot.lane.b32.xlu1 %v704_v2, %s1154_s14 }
 0x15f   : >> { %748 = vrot.lane.b32.xlu0 %v697_v32, %s1155_s20 }
 0x161   : >> { %750 = vrot.lane.b32.xlu1 %v704_v2, %s1155_s20 }
 0x163   : >> { %762 = vrot.lane.b32.xlu0 %v697_v32, %s1156_s27 }
 0x165   : >> { %764 = vrot.lane.b32.xlu1 %v704_v2, %s1156_s27 }
 0x167   : >> { %776 = vrot.lane.b32.xlu0 %v697_v32, %s1157_s28 }
 0x169   : >> { %778 = vrot.lane.b32.xlu1 %v704_v2, %s1157_s28 }
 0x1c5   : >> { %v707_v38 = vpop.permute.xlu0 %706 }
 0x1c7   : >> { %v709_v43 = vpop.permute.xlu1 %708 }
 0x1c8   : >> { %v711_v39 = vsel %vm710_vm6, %v707_v38, %v709_v43  ;;  %v712_v35 = vsel %vm710_vm6, %v709_v43, %v707_v38  ;;  %vm2001_vm6 = vnez %v1910_v25 }
 0x1c9   : >> { %v721_v44 = vpop.permute.xlu0 %720  ;;  %v713_v40 = vmul.f32 %v712_v35, %v1995_v61  ;;  %v714_v41 = vmul.f32 %v711_v39, %v1997_v3  ;;  %v2002_v2 = vsel %vm2001_vm6, %v1445_v47, 0.0  ;;  %v2006_v35 = vsel %vm2005_vm2, %v1511_v7, 0.0 }
 0x1ca   : >> { %vm2011_vm6 = vnez %v1949_v63  ;;  %vm2013_vm2 = vnez %v1955_v15 }
 0x1cb   : >> { %v723_v31 = vpop.permute.xlu1 %722  ;;  %v717_v39 = vcombine.low %v713_v40, %v714_v41  ;;  %v2012_v41 = vsel %vm2011_vm6, %v1589_v9, 0.0  ;;  %vm2019_vm6 = vnez %v1965_v6 }
 0x1cc   : >> { %v725_v62 = vsel %vm724_vm1, %v721_v44, %v723_v31  ;;  %v726_v5 = vsel %vm724_vm1, %v723_v31, %v721_v44  ;;  %vm2003_vm1 = vnez %v1912_v26 }
 0x1cd   : >> { %v735_v57 = vpop.permute.xlu0 %734  ;;  %v727_v38 = vmul.f32 %v726_v5, %v2002_v2  ;;  %v2004_v43 = vsel %vm2003_vm1, %v1445_v47, 0.0  ;;  %vm766_vm1 = vcmp.lt.s32.totalorder %v1684_v56, 96 }
 0x1ce   : >> { %v728_v44 = vmul.f32 %v725_v62, %v2004_v43  ;;  %v2010_v62 = vsel %vm2009_vm15, %v1589_v9, 0.0  ;;  %vm2017_vm15 = vnez %v1963_v4 }
 0x1cf   : >> { %v737_v1 = vpop.permute.xlu1 %736 }
 0x1d0   : >> { %v739_v14 = vsel %vm738_vm11, %v735_v57, %v737_v1  ;;  %v740_v34 = vsel %vm738_vm11, %v737_v1, %v735_v57  ;;  %vm2007_vm11 = vnez %v1924_v50  ;;  %v702_v1 = vmul.f32 %v700_v12, %v697_v32 }
 0x1d1   : >> { %v749_v31 = vpop.permute.xlu0 %748  ;;  %v741_v61 = vmul.f32 %v740_v34, %v2006_v35  ;;  %v2008_v57 = vsel %vm2007_vm11, %v1511_v7, 0.0  ;;  %v731_v2 = vcombine.low %v727_v38, %v728_v44  ;;  %vm2015_vm11 = vnez %v1957_v16 }
 0x1d2   : >> { %v742_v3 = vmul.f32 %v739_v14, %v2008_v57  ;;  %v719_v35 = vadd.f32 %v717_v39, %v702_v1 }
 0x1d3   : >> { %v751_v5 = vpop.permute.xlu1 %750 }
 0x1d4   : >> { %v753_v13 = vsel %vm752_vm8, %v749_v31, %v751_v5  ;;  %v754_v8 = vsel %vm752_vm8, %v751_v5, %v749_v31  ;;  %v745_v14 = vcombine.low %v741_v61, %v742_v3  ;;  %vm780_vm8 = vcmp.lt.s32.totalorder %v1684_v56, 80 }
 0x1d5   : >> { %v755_v40 = vmul.f32 %v753_v13, %v2010_v62  ;;  %v756_v34 = vmul.f32 %v754_v8, %v2012_v41  ;;  %v763_v43 = vpop.permute.xlu0 %762  ;;  %v733_v38 = vadd.f32 %v731_v2, %v719_v35  ;;  %v2014_v31 = vsel %vm2013_vm2, %v1625_v11, 0.0 }
 0x1d6   : >> { %v2016_v13 = vsel %vm2015_vm11, %v1625_v11, 0.0  ;;  %v2018_v2 = vsel %vm2017_vm15, %v1971_v0, 0.0 }
 0x1d7   : >> { %v765_v57 = vpop.permute.xlu1 %764  ;;  %v759_v44 = vcombine.low %v755_v40, %v756_v34  ;;  %v747_v61 = vadd.f32 %v745_v14, %v733_v38  ;;  %v2020_v34 = vsel %vm2019_vm6, %v1971_v0, 0.0  ;;  %v790_v14 = vstv %s212_s10  ;;  %s1066_s10 = scalar_lea.vmem (%p597_p10), %s1065_s29, 256 }
 0x1d8   : >> { %v767_v32 = vsel %vm766_vm1, %v763_v43, %v765_v57  ;;  %v768_v12 = vsel %vm766_vm1, %v765_v57, %v763_v43  ;;  %vm2021_vm1 = vcmask 1043456   ;;  %p1068_p1 = scmp.lt.s32.totalorder (%p597_p10), %s1066_s10, %s1060_s23 }
 0x1d9   : >> { %v769_v5 = vmul.f32 %v767_v32, %v2014_v31  ;;  %v770_v39 = vmul.f32 %v768_v12, %v2016_v13  ;;  %v777_v1 = vpop.permute.xlu0 %776  ;;  %v761_v41 = vadd.f32 %v759_v44, %v747_v61 }
 0x1da   : > { %p1069_p2 = por (%p597_p10), %p1068_p1, %p1067_p0 }
 0x1db   : >> { %v773_v3 = vcombine.low %v769_v5, %v770_v39  ;;  %v779_v8 = vpop.permute.xlu1 %778 }
 0x1dc   : >> { %v781_v62 = vsel %vm780_vm8, %v777_v1, %v779_v8  ;;  %v782_v56 = vsel %vm780_vm8, %v779_v8, %v777_v1  ;;  %vm2022_vm8 = vmmov %vm2021_vm1  ;;  %p1070_p3 = pnand (%p597_p10), %p1069_p2, %p1063_p13 }
 0x1dd   : >> { %v783_v40 = vmul.f32 %v781_v62, %v2018_v2  ;;  %v784_v43 = vmul.f32 %v782_v56, %v2020_v34  ;;  %v775_v35 = vadd.f32 %v773_v3, %v761_v41 }
 0x1df   : >> { %v787_v57 = vcombine.low %v783_v40, %v784_v43 }
 0x1e1   : >> { %v789_v32 = vadd.f32 %v787_v57, %v775_v35 }
 0x1e3   : >> { %v791_v12 = vmul.f32 %v790_v14, %v789_v32 }
 0x1e5   : >> { %v792_v38 = vsub.f32 %v1311_v17, %v791_v12 }
 0x1e7   : >> { %v793_v44 = vsub.f32 %v792_v38, %v1318_v33 }
 0x1e9   : >> { %v794_v31 = vmul.f32 1.442695, %v793_v44 }
 0x1eb   : >> { %1039 = vpow2.f32 %v794_v31 }
 0x1f5   : >> { %v1040_v5 = vpop.eup %1039 }
 0x1f6   : >> { %v797_v13 = vcombine.high %v1040_v5, %v1040_v5  ;;  %v799_v39 = vsel %vm2021_vm1, %v1040_v5, 0.0 }
 0x1f7   : >> { %v800_v61 = vrot.slane %v799_v39, 4 }
 0x1f8   : >> { %v806_v1 = vsel %vm2022_vm8, %v797_v13, 0.0 }
 0x1f9   : >> { %v801_v8 = vadd.f32 %v800_v61, %v799_v39  ;;  %v807_v3 = vrot.slane %v806_v1, 4 }
 0x1fb   : >> { %v802_v62 = vrot.slane %v801_v8, 2  ;;  %v808_v56 = vadd.f32 %v807_v3, %v806_v1 }
 0x1fd   : >> { %v803_v41 = vadd.f32 %v802_v62, %v801_v8  ;;  %v809_v2 = vrot.slane %v808_v56, 2 }
 0x1ff   : >> { %v804_v40 = vrot.slane %v803_v41, 1  ;;  %v810_v34 = vadd.f32 %v809_v2, %v808_v56 }
 0x201   : >> { %v805_v43 = vadd.f32 %v804_v40, %v803_v41  ;;  %v811_v35 = vrot.slane %v810_v34, 1 }
 0x203   : >> { %v812_v57 = vadd.f32 %v811_v35, %v810_v34  ;;  %1041 = vrcp.f32 %v805_v43 }
 0x205   : >> { %1043 = vrcp.f32 %v812_v57 }
 0x20d   : >> { %v1042_v14 = vpop.eup %1041 }
 0x20e   : >> { %v815_v32 = vmul.f32 %v1042_v14, %v805_v43 }
 0x20f   : >> { %v1044_v12 = vpop.eup %1043 }
 0x210   : >> { %v816_v38 = vmul.f32 %v1044_v12, %v812_v57  ;;  %v817_v44 = vsub.f32 2.0, %v815_v32 }
 0x212   : >> { %v818_v31 = vsub.f32 2.0, %v816_v38  ;;  %v819_v13 = vmul.f32 %v1042_v14, %v817_v44 }
 0x214   : >> { %v820_v39 = vmul.f32 %v1044_v12, %v818_v31  ;;  %599 = sbr.rel (!%p597_p10) target bundleno = 193 (0xc1), region = 97 }
 0x216   : >> { %v823_v61 = vcombine.low %v819_v13, %v820_v39 }
 0x218   : >> { %v825_v0 = vmul.f32 %v1040_v5, %v823_v61  }
 0x21a   : >> { %v2023_v61 = vmov %v825_v0  ;;  %826 = vst [vmem:[%s204_s22] sm:$0xff] (%p597_p10), %v825_v0 }
 0x21b   : > { %1073 = shalt.err (!%p1070_p3)
}
 0x21c   : > { %s1074_s19 = scalar_lea.hbm %s1828_s7, 128  ;;  %s1078_s22 = scalar_lea.hbm %s1872_s4, 256 }
 0x21d   : > { %p1075_p4 = scmp.ne.s32.totalorder %s1828_s7, %s1074_s19  ;;  %p1079_p9 = scmp.lt.u32.totalorder %s1828_s7, %s1872_s4 }
 0x21e   : > { %p1080_p10 = scmp.lt.u32.totalorder %s1078_s22, %s1074_s19  ;;  %p1082_p12 = scmp.lt.u32.totalorder %s1074_s19, %s1828_s7 }
 0x21f   : > { %p1076_p7 = pnand %p1075_p4, %p1222_p5 }
 0x220   : > { %p1081_p11 = por %p1080_p10, %p1079_p9 }
 0x221   : > { %p1077_p8 = pneg %p1076_p7 }
 0x222   : > { %p1083_p13 = por %p1082_p12, %p1081_p11 }
 0x224   : > { %p1084_p0 = pnand %p1083_p13, %p1077_p8 }
 0x226   : > { %1087 = shalt.err (!%p1084_p0)
}
 0x227   : > { %956 = dma.vmem_to_hbm [thread:$0]  (%p1222_p5), %s843_s11, 128, %s1828_s7, %s828_s13  }
 0x228 PF: > { %p968_p1 = scmp.ge.s32.totalorder %s1134_s18, 2  ;;  %s854_s27 = sand.u32 1, %s1122_s15  }
 0x229   : > { %s855_s28 = scalar_lea.sflag [#allocation3], %s854_s27 }
 0x22a   : > { %p963_p2 = pnand %p968_p1, %p1226_p6 }
 0x22c   : > { %1117 = dma.done.wait (!%p963_p2), %s855_s28, 128  }
 0x22d   : > { %1119 = vsyncadd (!%p963_p2), %s855_s28, 4294967168  ;;  %p15_p3 = scmp.ge.s32.totalorder %s1209_s21, 4   ;;  %s2024_s15 = smov %s1126_s16 }
 0x22e   : > { %s2025_s16 = smov %s1130_s17  ;;  %s2026_s17 = smov %s1220_s24 }
 0x22f   : > { %s2027_s18 = smov %s1209_s21  ;;  %17 = sbr.rel (!%p15_p3) target bundleno = 4 (0x4), region = 108 }
 0x236   :  { %860 = vsyncpa [#allocation3], 1 }
 0x237   :  { %862 = vsyncpa [#allocation3 + $0x1], 1 }
 0x238   :  { %863 = vsyncpa [#allocation4], 1 }
 0x239   :  { %865 = vsyncpa [#allocation4 + $0x1], 1 }

</bundles_post_ra>
